<compile_context>
chip_gen: v7x
topology: tpu7x:2x2x1
jax: 0.10.0
libtpu: 0.0.40
codegen_flags: <defaults>
</compile_context>

<pallas_src>
import functools

import jax
import jax.numpy as jnp
from jax import lax
from jax.experimental import pallas as pl
from jax.experimental.pallas import tpu as pltpu

LANE = 128
_NEG_INF = -1e30  # softmax mask value baked into the padded classifier bias lanes


def _round_up(n, m=LANE):
    return ((n + m - 1) // m) * m


# ----------------------------------------------------------------------------
# pltpu.roll direction probe (run once, OUTSIDE any jit trace).
# ----------------------------------------------------------------------------
@functools.lru_cache(maxsize=None)
def _roll_matches_jnp_roll():
    """True iff pltpu.roll(x, s)[j] == x[(j - s) % N] (i.e. jnp.roll semantics)."""
    def probe(x_ref, o_ref):
        o_ref[...] = pltpu.roll(x_ref[...], 1, 1)

    x = lax.broadcasted_iota(jnp.int32, (8, LANE), 1)
    out = pl.pallas_call(
        probe, out_shape=jax.ShapeDtypeStruct((8, LANE), jnp.int32))(x)
    return int(out[0, 0]) == LANE - 1


@functools.lru_cache(maxsize=None)
def _gate_roll_shifts(H):
    """Static roll shifts that bring gate block k (lanes [k*H,(k+1)*H)) to lanes [0,H)."""
    GP = 4 * H
    if _roll_matches_jnp_roll():
        to_front = lambda k: (GP - k * H) % GP
    else:
        to_front = lambda k: (k * H) % GP
    return (to_front(1), to_front(2), to_front(3))  # f, g, o


# ----------------------------------------------------------------------------
# Fused kernel: embed-gather + stacked (question|answer) LSTM + mean-pool + head.
# ----------------------------------------------------------------------------
def _amrnl_fused_kernel(
        q_ids_ref, a_ids_ref, u_ids_ref,            # SMEM int32 id tables
        w2v_hbm, uemb_hbm,                           # embedding tables (HBM, pl.ANY)
        wih_t_ref, whh_t_ref, b_gates_ref,           # LSTM weights (VMEM)
        wq_t_ref, wa_t_ref, wu_t_ref, b_head_ref,    # head weights (VMEM)
        wc_t_ref, bc_ref,                            # classifier (VMEM)
        probs_ref, pred_ref,                         # outputs (VMEM)
        xbuf, ubuf, gx_ref, dma_sem,                 # scratch
        *, gate_shifts):
    B, L = q_ids_ref.shape
    B2 = 2 * B                       # question rows [0:B], answer rows [B:2B]
    Ep, GP = wih_t_ref.shape         # GP == 4*H : packed gate / hidden lane width
    H = GP // 4
    Cp = wc_t_ref.shape[1]
    sf, sg, so = gate_shifts

    # --- fused embedding gather: DMA rows straight HBM -> VMEM scratch --------
    user_copies = []
    for b in range(B):
        cp = pltpu.make_async_copy(
            uemb_hbm.at[u_ids_ref[b]], ubuf.at[b], dma_sem.at[1])
        cp.start()
        user_copies.append(cp)

    word_copies = []
    for t in range(L):
        for b in range(B2):
            tok = q_ids_ref[b, t] if b < B else a_ids_ref[b - B, t]
            cp = pltpu.make_async_copy(
                w2v_hbm.at[tok], xbuf.at[t * B2 + b], dma_sem.at[0])
            cp.start()
            word_copies.append(cp)
    for cp in word_copies:           # token rows needed for the hoisted projection
        cp.wait()

    # --- hoisted input->gate projection: one MXU matmul for all timesteps -----
    gx_ref[...] = (
        jnp.dot(xbuf[...].astype(jnp.bfloat16), wih_t_ref[...],
                preferred_element_type=jnp.float32)
        + b_gates_ref[...]
    ).reshape(L, B2, GP)

    whh_t = whh_t_ref[...]           # (GP, GP) bf16, 8 vregs: cheap to keep resident
    # Hoisted once (JAX does not CSE broadcast_in_dim inside the loop).
    lane_mask = lax.broadcasted_iota(jnp.int32, (B2, GP), 1) < H

    def step(t, carry):
        # Recurrent state stays f32; only MXU operands are bf16.
        h, c, acc = carry
        g = gx_ref[t] + jnp.dot(h.astype(jnp.bfloat16), whh_t,
                                preferred_element_type=jnp.float32)  # (B2, GP)
        sig = jax.nn.sigmoid(g)      # [sig(i)|sig(f)|sig(g)|sig(o)] packed blocks
        tnh = jnp.tanh(g)
        # Lane rotations (XLU) realign the f/g/o blocks onto the cell lanes [0,H).
        f_al = pltpu.roll(sig, sf, 1)
        g_al = pltpu.roll(tnh, sg, 1)
        o_al = pltpu.roll(sig, so, 1)
        c_n = jnp.where(lane_mask, f_al * c + sig * g_al, 0.0)
        h_n = jnp.where(lane_mask, o_al * jnp.tanh(c_n), 0.0)
        return h_n, c_n, acc + h_n

    zeros = jnp.zeros((B2, GP), jnp.float32)
    # L is small & static -> fully unroll so MXU/EUP/XLU work interleaves across steps.
    _, _, acc = lax.fori_loop(0, L, step, (zeros, zeros, zeros), unroll=True)
    pooled = acc * (1.0 / L)         # (B2, GP) mean over time; lanes >= H are zero

    for cp in user_copies:           # issued first, long since landed
        cp.wait()

    # --- head: three accumulated dots (no concat relayout), then classifier ----
    s = jnp.tanh(
        jnp.dot(pooled[:B].astype(jnp.bfloat16), wq_t_ref[...],
                preferred_element_type=jnp.float32)
        + jnp.dot(pooled[B:].astype(jnp.bfloat16), wa_t_ref[...],
                  preferred_element_type=jnp.float32)
        + jnp.dot(ubuf[...].astype(jnp.bfloat16), wu_t_ref[...],
                  preferred_element_type=jnp.float32)
        + b_head_ref[...])
    logits = (jnp.dot(s.astype(jnp.bfloat16), wc_t_ref[...],
                      preferred_element_type=jnp.float32)
              + bc_ref[...])         # padded classes sit at -1e30 via the padded bias

    m = jnp.max(logits, axis=-1, keepdims=True)
    e = jnp.exp(logits - m)          # padded classes underflow to exactly 0
    probs_ref[...] = e * pl.reciprocal(jnp.sum(e, axis=-1, keepdims=True),
                                       approx=True)

    # argmax from the logits, reusing m; padded classes (-1e30) can never win.
    idx = lax.broadcasted_iota(jnp.int32, logits.shape, 1)
    pred_ref[...] = jnp.min(jnp.where(logits >= m, idx, Cp), axis=-1, keepdims=True)


def _amrnl_pallas(q_ids, a_ids, u_ids, kp, *, gate_shifts):
    B, L = q_ids.shape
    B2 = 2 * B
    Ep, GP = kp["wih_t"].shape
    Cp = kp["wc_t"].shape[1]

    kernel = functools.partial(_amrnl_fused_kernel, gate_shifts=gate_shifts)
    smem = pl.BlockSpec(memory_space=pltpu.MemorySpace.SMEM)
    vmem = pl.BlockSpec(memory_space=pltpu.MemorySpace.VMEM)
    hbm = pl.BlockSpec(memory_space=pl.ANY)

    return pl.pallas_call(
        kernel,
        out_shape=(
            jax.ShapeDtypeStruct((B, Cp), jnp.float32),   # softmax probabilities
            jax.ShapeDtypeStruct((B, 1), jnp.int32),      # argmax prediction
        ),
        in_specs=[smem, smem, smem, hbm, hbm] + [vmem] * 9,
        out_specs=(vmem, vmem),
        scratch_shapes=[
            pltpu.VMEM((L * B2, Ep), jnp.float32),   # gathered token embeddings
            pltpu.VMEM((B, GP), jnp.float32),        # gathered user embeddings
            pltpu.VMEM((L, B2, GP), jnp.float32),    # hoisted input->gate projections
            pltpu.SemaphoreType.DMA((2,)),           # [0]=token rows, [1]=user rows
        ],
    )(q_ids, a_ids, u_ids, kp["word2vec"], kp["user_embed"],
      kp["wih_t"], kp["whh_t"], kp["b_gates"],
      kp["wq_t"], kp["wa_t"], kp["wu_t"], kp["b_head"],
      kp["wc_t"], kp["bc"])


# ----------------------------------------------------------------------------
# One-time parameter prep: transpose, pack gates, zero-pad to 128 lanes, bf16.
# ----------------------------------------------------------------------------
def prepare_params(raw):
    E = raw["word2vec"].shape[1]
    H = raw["w_hh"].shape[1]
    C = raw["Wc"].shape[0]
    GP = 4 * H                       # packed gate width == hidden lane width
    assert GP % LANE == 0, (
        "packed-gate layout requires 4*H to be a multiple of 128 "
        "(H multiple of 32); other H would need the per-gate-block layout")
    Ep, Cp = _round_up(E), _round_up(C)

    def pad2(x, r, c):
        return jnp.zeros((r, c), jnp.float32).at[:x.shape[0], :x.shape[1]].set(x)

    # Gates stay in PyTorch order [i|f|g|o], each H lanes wide, packed into GP lanes.
    wih_t = pad2(raw["w_ih"].T, Ep, GP)                            # rows >= E zero
    whh_t = pad2(raw["w_hh"].T, GP, GP)                            # rows >= H zero
    b_gates = (raw["b_ih"] + raw["b_hh"]).reshape(1, GP)

    wq_t = pad2(raw["Wq"].T, GP, GP)
    wa_t = pad2(raw["Wa"].T, GP, GP)
    wu_t = pad2(raw["Wu"].T, GP, GP)
    b_head = pad2((raw["bq"] + raw["ba"] + raw["bu"]).reshape(1, H), 1, GP)
    wc_t = pad2(raw["Wc"].T, GP, Cp)
    bc = jnp.full((1, Cp), _NEG_INF, jnp.float32).at[0, :C].set(raw["bc"])

    return {
        # Embedding tables stay in HBM; rows are DMA'd in-kernel.  Kept f32 so a
        # single gathered row is a contiguous, word-aligned DMA destination.
        "word2vec": pad2(raw["word2vec"], raw["word2vec"].shape[0], Ep),
        "user_embed": pad2(raw["user_embed"], raw["user_embed"].shape[0], GP),
        # LSTM (packed-gate layout)
        "wih_t": wih_t.astype(jnp.bfloat16),
        "whh_t": whh_t.astype(jnp.bfloat16),
        "b_gates": b_gates,
        # head
        "wq_t": wq_t.astype(jnp.bfloat16),
        "wa_t": wa_t.astype(jnp.bfloat16),
        "wu_t": wu_t.astype(jnp.bfloat16),
        "b_head": b_head,
        "wc_t": wc_t.astype(jnp.bfloat16),
        "bc": bc,
    }


# ----------------------------------------------------------------------------
# Full AMRNL forward (classification branch)
# ----------------------------------------------------------------------------
@functools.partial(jax.jit, static_argnames=("num_class", "gate_shifts"))
def _amrnl_forward_jit(kernel_params, question_list, answer_list, user_list, *,
                       num_class, gate_shifts):
    B, Lq = question_list.shape
    Ba, La = answer_list.shape
    assert B == Ba and Lq == La, "fused q/a path assumes equal padded lengths"
    probs_pad, pred = _amrnl_pallas(
        question_list.astype(jnp.int32), answer_list.astype(jnp.int32),
        user_list.astype(jnp.int32), kernel_params, gate_shifts=gate_shifts)
    return probs_pad[:, :num_class], pred[:, 0]


def amrnl_forward(kernel_params, question_list, answer_list, user_list, *, num_class):
    H = kernel_params["whh_t"].shape[1] // 4
    gate_shifts = _gate_roll_shifts(H)   # concrete; probes pltpu.roll once, cached
    return _amrnl_forward_jit(kernel_params, question_list, answer_list, user_list,
                              num_class=num_class, gate_shifts=gate_shifts)


def init_params(key, vocab, embed_dim, hidden, num_class, user_count):
    ks = jax.random.split(key, 12)
    scale = 0.1
    params = {
        "word2vec": scale * jax.random.normal(ks[0], (vocab, embed_dim), jnp.float32),
        "user_embed": scale * jax.random.normal(ks[1], (user_count + 1, hidden), jnp.float32),
        # LSTM (PyTorch layout: (4H, in), gate order i, f, g, o)
        "w_ih": scale * jax.random.normal(ks[2], (4 * hidden, embed_dim), jnp.float32),
        "w_hh": scale * jax.random.normal(ks[3], (4 * hidden, hidden), jnp.float32),
        "b_ih": scale * jax.random.normal(ks[4], (4 * hidden,), jnp.float32),
        "b_hh": scale * jax.random.normal(ks[5], (4 * hidden,), jnp.float32),
        # Linear layers (PyTorch layout: (out, in))
        "Wq": scale * jax.random.normal(ks[6], (hidden, hidden), jnp.float32),
        "bq": scale * jax.random.normal(ks[7], (hidden,), jnp.float32),
        "Wa": scale * jax.random.normal(ks[8], (hidden, hidden), jnp.float32),
        "ba": scale * jax.random.normal(ks[9], (hidden,), jnp.float32),
        "Wu": scale * jax.random.normal(ks[10], (hidden, hidden), jnp.float32),
        "bu": jnp.zeros((hidden,), jnp.float32),
        "Wc": scale * jax.random.normal(ks[11], (num_class, hidden), jnp.float32),
        "bc": jnp.zeros((num_class,), jnp.float32),
    }
    # nn.Embedding padding_idx=user_count row is zero-initialized.
    params["user_embed"] = params["user_embed"].at[user_count].set(0.0)
    return params


def _reference_forward(raw, question_list, answer_list, user_list):
    """Pure-JAX f32 reference matching the PyTorch classification branch."""
    H = raw["w_hh"].shape[1]

    def lstm_meanpool_ref(ids):
        x = raw["word2vec"][ids]                                   # (B, L, E)
        B, L, _ = x.shape
        h = jnp.zeros((B, H)); c = jnp.zeros((B, H)); acc = jnp.zeros((B, H))
        for t in range(L):
            g = (x[:, t] @ raw["w_ih"].T + raw["b_ih"]
                 + h @ raw["w_hh"].T + raw["b_hh"])
            i = jax.nn.sigmoid(g[:, :H]); f = jax.nn.sigmoid(g[:, H:2 * H])
            gg = jnp.tanh(g[:, 2 * H:3 * H]); o = jax.nn.sigmoid(g[:, 3 * H:])
            c = f * c + i * gg
            h = o * jnp.tanh(c)
            acc = acc + h
        return acc / L

    q = lstm_meanpool_ref(question_list)
    a = lstm_meanpool_ref(answer_list)
    u = raw["user_embed"][user_list]
    s = jnp.tanh(q @ raw["Wq"].T + raw["bq"] + a @ raw["Wa"].T + raw["ba"]
                 + u @ raw["Wu"].T + raw["bu"])
    logits = s @ raw["Wc"].T + raw["bc"]
    return jax.nn.softmax(logits, axis=-1), jnp.argmax(logits, axis=-1)


if __name__ == "__main__":
    B, Lq, La = 4, 8, 8
    E = 32          # word2vec embedding dim == lstm input size
    H = 32          # args.lstm_hidden_size (args.bidirectional=False)
    C = 4           # args.num_class
    VOCAB = 50
    USER_COUNT = 10

    key = jax.random.PRNGKey(0)
    pkey, k_q, k_a, k_u = jax.random.split(key, 4)
    raw_params = init_params(pkey, VOCAB, E, H, C, USER_COUNT)
    kernel_params = prepare_params(raw_params)      # one-time transpose/pack/pad prep

    question_list = jax.random.randint(k_q, (B, Lq), 0, VOCAB, dtype=jnp.int32)
    answer_list = jax.random.randint(k_a, (B, La), 0, VOCAB, dtype=jnp.int32)
    user_list = jax.random.randint(k_u, (B,), 0, USER_COUNT, dtype=jnp.int32)

    score, predic = amrnl_forward(kernel_params, question_list, answer_list, user_list,
                                  num_class=C)
    jax.block_until_ready((score, predic))

    assert score.shape == (B, C) and predic.shape == (B,)
    assert bool(jnp.all(jnp.isfinite(score)))
    # approx reciprocal in the softmax -> slightly looser sum-to-one tolerance
    assert bool(jnp.allclose(jnp.sum(score, axis=-1), 1.0, atol=2e-3))
    assert bool(jnp.all((predic >= 0) & (predic < C)))
    # self-consistency: in-kernel argmax matches argmax of the returned probabilities
    assert bool(jnp.all(predic == jnp.argmax(score, axis=-1)))
    # matches the f32 pure-JAX reference (bf16 MXU operands -> loose tolerance)
    score_ref, _ = _reference_forward(raw_params, question_list, answer_list, user_list)
    assert bool(jnp.allclose(score, score_ref, atol=2e-2))
    print("KERNEL_OK")
</pallas_src>

<mosaic_0001>
module attributes {stable_mosaic.version = 11 : i64} {
  func.func @probe(%arg0: memref<8x128xi32, #tpu.memory_space<vmem>>, %arg1: memref<8x128xi32, #tpu.memory_space<vmem>>) attributes {dimension_semantics = [], scalar_prefetch = 0 : i64, scratch_operands = 0 : i64, tpu.core_type = #tpu.core_type<tc>} {
    %c0 = arith.constant 0 : index
    %c0_0 = arith.constant 0 : index
    %0 = vector.load %arg0[%c0, %c0_0] : memref<8x128xi32, #tpu.memory_space<vmem>>, vector<8x128xi32>
    %c1_i32 = arith.constant 1 : i32
    %1 = tpu.dynamic_rotate %0 by %c1_i32 dim 1 : vector<8x128xi32>, i32 -> vector<8x128xi32>
    %c0_1 = arith.constant 0 : index
    %c0_2 = arith.constant 0 : index
    %2 = vector.load %arg1[%c0_1, %c0_2] : memref<8x128xi32, #tpu.memory_space<vmem>>, vector<8x128xi32>
    tpu.vector_store %arg1[%c0_1, %c0_2], %1 {strides = array<i32>} : memref<8x128xi32, #tpu.memory_space<vmem>>, vector<8x128xi32>,
    return
  }
}

</mosaic_0001>

<bundles_post_ra>
// kernel: tpu_custom_call.1
= control target key start
LH: loop header
LB: loop body
LE: loop exit
PB: predicated region body
PF: predicated region fallthrough
CT: control target
= control target key end

     0   :  { %6 = vsyncpa [#allocation3], 0  ;;  %s128_s0 = inlined_call_operand.hbm [shape: s32[8,128], index: 0, kind: input, shape index: {}]   ;;  %s129_s1 = inlined_call_operand.hbm [shape: s32[8,128], index: 1, kind: output, shape index: {}]  }
   0x1   :  { %7 = vsyncpa [#allocation4], 0  ;;  %s91_s6 = smov [#allocation2]   ;;  %s43_s10 = scalar_lea.hbm %s128_s0, 128 }
   0x2   :  { %s14_s7 = sshll.u32 %s91_s6, 4  ;;  %p44_p0 = scmp.ne.s32.totalorder %s128_s0, %s43_s10  ;;  %s15_s7 = int_to_ptr.vmem [resolvable:$true] %s14_s7 }
   0x3   :  { %p47_p1 = scmp.lt.u32.totalorder %s43_s10, %s128_s0 }
   0x5   :  { %p49_p2 = pnand %p47_p1, %p44_p0 }
   0x7   :  { %52 = shalt.err (!%p49_p2)
}
   0x8   :  { %s53_s15 = scalar_lea.vmem %s15_s7, 128  ;;  %p58_p4 = scmp.lt.s32.totalorder %s15_s7, %s15_s7 }
   0x9   :  { %p54_p3 = scmp.ne.s32.totalorder %s15_s7, %s53_s15  ;;  %p59_p5 = scmp.lt.s32.totalorder %s53_s15, %s53_s15 }
   0xb   :  { %p60_p6 = por %p59_p5, %p58_p4 }
   0xd   :  { %p61_p7 = pnand %p60_p6, %p54_p3 }
   0xf   :  { %64 = shalt.err (!%p61_p7)
}
  0x10   :  { %17 = dma.hbm_to_vmem [thread:$0]  %s128_s0, 128, %s15_s7, [#allocation3]  }
  0x11   :  { %87 = dma.done.wait [#allocation3], 128  }
  0x12   :  { %88 = vsyncadd [#allocation3], 4294967168  ;;  %v21_v0 = vld [vmem:[#allocation2] sm:$0xff]  ;;  %s92_s18 = smov 1   ;;  %s93_s19 = smov [#allocation5]  }
  0x13   :  { %22 = vrot.lane.b32.xlu0 %v21_v0, %s92_s18  ;;  %s31_s20 = sshll.u32 %s93_s19, 4  ;;  %s32_s20 = int_to_ptr.vmem [resolvable:$true] %s31_s20 }
  0x14   :  { %s65_s21 = scalar_lea.vmem %s32_s20, 128  ;;  %p70_p9 = scmp.lt.s32.totalorder %s32_s20, %s32_s20 }
  0x15   :  { %p66_p8 = scmp.ne.s32.totalorder %s32_s20, %s65_s21  ;;  %p71_p10 = scmp.lt.s32.totalorder %s65_s21, %s65_s21 }
  0x17   :  { %p72_p11 = por %p71_p10, %p70_p9 }
  0x19   :  { %p73_p12 = pnand %p72_p11, %p66_p8 }
  0x85   :  { %v23_v1 = vpop.permute.xlu0 %22 }
  0x86   :  { %24 = vst [vmem:[#allocation5] sm:$0xff] %v23_v1 }
  0x87   :  { %76 = shalt.err (!%p73_p12)
}
  0x88   :  { %s77_s0 = scalar_lea.hbm %s129_s1, 128 }
  0x89   :  { %p78_p13 = scmp.ne.s32.totalorder %s129_s1, %s77_s0  ;;  %p81_p0 = scmp.lt.u32.totalorder %s77_s0, %s129_s1 }
  0x8b   :  { %p83_p1 = pnand %p81_p0, %p78_p13 }
  0x8d   :  { %86 = shalt.err (!%p83_p1)
}
  0x8e   :  { %34 = dma.vmem_to_hbm [thread:$0]  %s32_s20, 128, %s129_s1, [#allocation4]  }
  0x8f   :  { %89 = dma.done.wait [#allocation4], 128  }
  0x90   :  { %90 = vsyncadd [#allocation4], 4294967168 }
  0x91   :  { %38 = vsyncpa [#allocation3], 1 }
  0x92   :  { %39 = vsyncpa [#allocation4], 1 }

</bundles_post_ra>
